<compile_context>
chip_gen: v5e
topology: v5e:2x2
jax: 0.10.0
libtpu: 0.0.40
codegen_flags: <defaults>
</compile_context>

<pallas_src>
import functools

import jax
import jax.numpy as jnp
from jax.experimental import pallas as pl
from jax.experimental.pallas import tpu as pltpu


def _round_up(v, m):
    return (v + m - 1) // m * m


# --------------------------- Pass 1: edge aggregation ---------------------------
def _gine_aggregate_kernel(x_ref, ea_ref, src_ref, dst_ref, agg_ref, *, mxu_dtype):
    j = pl.program_id(0)                       # edge-tile index ("arbitrary" reduction)
    te = ea_ref.shape[0]
    n_pad = agg_ref.shape[0]

    # Output block index is constant in j -> agg_ref stays resident in VMEM across the
    # whole reduction and is flushed to HBM only once (do NOT make the index_map j-dependent).
    @pl.when(j == 0)
    def _init():
        agg_ref[...] = jnp.zeros_like(agg_ref)

    # Gather source-node features via an in-kernel one-hot matmul (MXU).
    src = src_ref[...]                                                   # [te, 1] int32
    gmat = jax.lax.broadcasted_iota(jnp.int32, (te, n_pad), 1) == src    # [te, n_pad]
    x_src = jnp.dot(gmat.astype(mxu_dtype), x_ref[...].astype(mxu_dtype),
                    preferred_element_type=jnp.float32)                  # [te, h_pad]

    # GINE message: ReLU(x_src + edge_attr).  Padded edges have src/dst = -1 and zero
    # edge_attr, so they contribute nothing.
    msg = jnp.maximum(x_src + ea_ref[...], 0.0)                          # [te, h_pad]

    # Scatter-add over destinations: one-hot [n_pad, te] @ msg (MXU), accumulated in f32
    # directly into the resident output block.
    dst = dst_ref[...]                                                   # [1, te] int32
    smat = jax.lax.broadcasted_iota(jnp.int32, (n_pad, te), 0) == dst    # [n_pad, te]
    agg_ref[...] += jnp.dot(smat.astype(mxu_dtype), msg.astype(mxu_dtype),
                            preferred_element_type=jnp.float32)


# ----------------------- Pass 2: MLP + residual + LayerNorm -----------------------
def _gine_node_kernel(x_ref, agg_ref, w1_ref, w2_ref, g_ref, b_ref, out_ref, *,
                      h_real, mxu_dtype, gelu_approx):
    x = x_ref[...].astype(jnp.float32)
    h = x + agg_ref[...]                                  # (1+eps)*x + agg, eps=0

    h1 = jnp.dot(h.astype(mxu_dtype), w1_ref[...].astype(mxu_dtype),
                 preferred_element_type=jnp.float32)
    h1 = jax.nn.gelu(h1, approximate=gelu_approx)         # erf-GELU by default (torch parity)
    conv = jnp.dot(h1.astype(mxu_dtype), w2_ref[...].astype(mxu_dtype),
                   preferred_element_type=jnp.float32)

    y = x + conv                                          # residual (dropout p=0 -> identity)

    # LayerNorm over the real H lanes only (H was padded to 128 for lane density).
    tn, h_pad = out_ref.shape
    valid = jax.lax.broadcasted_iota(jnp.int32, (tn, h_pad), 1) < h_real
    y = jnp.where(valid, y, 0.0)
    mu = jnp.sum(y, axis=-1, keepdims=True) * (1.0 / h_real)
    d = jnp.where(valid, y - mu, 0.0)
    var = jnp.sum(d * d, axis=-1, keepdims=True) * (1.0 / h_real)
    out = d * jax.lax.rsqrt(var + 1e-5) * g_ref[...] + b_ref[...]
    out_ref[...] = out.astype(out_ref.dtype)


def conv_layer_gine(x, edge_index, edge_attr, w1_t, w2_t, gamma, beta, *,
                    node_tile=128, edge_tile=256, mxu_dtype=jnp.float32,
                    gelu_approx=False):
    """x: [N,H] f32, edge_index: [2,E] int, edge_attr: [E,H] f32,
       w1_t: [H,4H], w2_t: [4H,H] (torch Linear weights pre-transposed), gamma/beta: [1,H].

       mxu_dtype=jnp.bfloat16 feeds bf16 operands to the MXU (f32 accumulation): ~2-4x on the
       matmul-bound part on v6e/v7x but breaks 1e-4 parity with the f32 reference.
       gelu_approx=True uses tanh-GELU (EUP) instead of torch's erf-GELU (VALU polynomial)."""
    n, h = x.shape
    e = edge_index.shape[1]
    hi = w1_t.shape[1]

    h_pad = _round_up(h, 128)
    hi_pad = _round_up(hi, 128)
    node_tile = min(node_tile, _round_up(n, 8))
    n_pad = _round_up(n, node_tile)
    edge_tile = min(edge_tile, _round_up(e, 128))
    e_pad = _round_up(e, edge_tile)

    pad2 = lambda a, r, c: jnp.pad(a, ((0, r - a.shape[0]), (0, c - a.shape[1])))
    xp = pad2(x, n_pad, h_pad)
    eap = pad2(edge_attr, e_pad, h_pad)
    w1p = pad2(w1_t, h_pad, hi_pad)
    w2p = pad2(w2_t, hi_pad, h_pad)
    gp = pad2(gamma, 1, h_pad)
    bp = pad2(beta, 1, h_pad)

    # Padded edges get index -1 -> match no node in either one-hot (contribute nothing).
    src = jnp.full((e_pad,), -1, jnp.int32).at[:e].set(edge_index[0].astype(jnp.int32))
    dst = jnp.full((e_pad,), -1, jnp.int32).at[:e].set(edge_index[1].astype(jnp.int32))
    src = src.reshape(e_pad, 1)       # lane-broadcast vs [te, n_pad] iota in-kernel
    dst = dst.reshape(1, e_pad)       # sublane-broadcast vs [n_pad, te] iota in-kernel

    ge = e_pad // edge_tile
    gn = n_pad // node_tile

    # ----- pass 1: edge aggregation (edge_attr streamed exactly once) -----
    flops_a = int(2 * 2 * e_pad * n_pad * h_pad)            # gather + scatter one-hot matmuls
    bytes_a = int(4 * (n_pad * h_pad                         # x read once (resident)
                       + e_pad * h_pad                       # edge_attr read once
                       + n_pad * h_pad)                      # agg written once
                  + 4 * 2 * e_pad)                           # src/dst
    vmem_a = 4 * (2 * n_pad * h_pad            # resident x (double-buffered by the pipeline)
                  + 2 * edge_tile * h_pad      # streamed edge_attr tiles
                  + n_pad * h_pad              # resident output accumulator
                  + 4 * edge_tile)             # src/dst tiles
    agg = pl.pallas_call(
        functools.partial(_gine_aggregate_kernel, mxu_dtype=mxu_dtype),
        out_shape=jax.ShapeDtypeStruct((n_pad, h_pad), jnp.float32),
        grid_spec=pltpu.PrefetchScalarGridSpec(
            num_scalar_prefetch=0,
            grid=(ge,),
            in_specs=[
                pl.BlockSpec((n_pad, h_pad), lambda j: (0, 0)),       # x (resident in VMEM)
                pl.BlockSpec((edge_tile, h_pad), lambda j: (j, 0)),   # edge_attr tile
                pl.BlockSpec((edge_tile, 1), lambda j: (j, 0)),       # src indices tile
                pl.BlockSpec((1, edge_tile), lambda j: (0, j)),       # dst indices tile
            ],
            out_specs=pl.BlockSpec((n_pad, h_pad), lambda j: (0, 0)), # accumulate in place
        ),
        compiler_params=pltpu.CompilerParams(
            dimension_semantics=("arbitrary",),
            vmem_limit_bytes=int(min(max(2 * vmem_a, 32 << 20), 100 << 20))),
        cost_estimate=pl.CostEstimate(flops=flops_a, transcendentals=0,
                                      bytes_accessed=bytes_a),
    )(xp, eap, src, dst)

    # ----- pass 2: MLP + residual + LayerNorm over 128-row node tiles ("parallel") -----
    flops_b = int(2 * n_pad * h_pad * hi_pad + 2 * n_pad * hi_pad * h_pad)
    bytes_b = int(4 * (n_pad * h_pad            # x
                       + n_pad * h_pad          # agg
                       + h_pad * hi_pad         # W1
                       + hi_pad * h_pad         # W2
                       + 2 * h_pad              # gamma/beta
                       + n_pad * h_pad))        # out write
    vmem_b = 4 * (2 * 2 * node_tile * h_pad                     # x/agg tiles (double-buffered)
                  + 2 * (h_pad * hi_pad + hi_pad * h_pad)       # resident weights
                  + 2 * node_tile * h_pad                       # output tile
                  + 4 * h_pad)                                  # gamma/beta
    out = pl.pallas_call(
        functools.partial(_gine_node_kernel, h_real=h, mxu_dtype=mxu_dtype,
                          gelu_approx=gelu_approx),
        out_shape=jax.ShapeDtypeStruct((n_pad, h_pad), x.dtype),
        grid_spec=pltpu.PrefetchScalarGridSpec(
            num_scalar_prefetch=0,
            grid=(gn,),
            in_specs=[
                pl.BlockSpec((node_tile, h_pad), lambda i: (i, 0)),   # x tile
                pl.BlockSpec((node_tile, h_pad), lambda i: (i, 0)),   # agg tile
                pl.BlockSpec((h_pad, hi_pad), lambda i: (0, 0)),      # W1^T (resident)
                pl.BlockSpec((hi_pad, h_pad), lambda i: (0, 0)),      # W2^T (resident)
                pl.BlockSpec((1, h_pad), lambda i: (0, 0)),           # LN gamma
                pl.BlockSpec((1, h_pad), lambda i: (0, 0)),           # LN beta
            ],
            out_specs=pl.BlockSpec((node_tile, h_pad), lambda i: (i, 0)),
        ),
        compiler_params=pltpu.CompilerParams(
            dimension_semantics=("parallel",),    # megacore-shardable on v7x when gn >= 2
            vmem_limit_bytes=int(min(max(2 * vmem_b, 32 << 20), 100 << 20))),
        cost_estimate=pl.CostEstimate(flops=flops_b,
                                      transcendentals=int(n_pad * hi_pad),
                                      bytes_accessed=bytes_b),
    )(xp, agg, w1p, w2p, gp, bp)
    return out[:n, :h]


def _reference(x, edge_index, edge_attr, w1_t, w2_t, gamma, beta):
    src, dst = edge_index[0], edge_index[1]
    msg = jnp.maximum(x[src] + edge_attr, 0.0)
    agg = jax.ops.segment_sum(msg, dst, num_segments=x.shape[0])
    h = x + agg
    conv = jax.nn.gelu(h @ w1_t, approximate=False) @ w2_t
    y = x + conv
    mu = y.mean(-1, keepdims=True)
    var = ((y - mu) ** 2).mean(-1, keepdims=True)
    return (y - mu) / jnp.sqrt(var + 1e-5) * gamma + beta


if __name__ == "__main__":
    key = jax.random.PRNGKey(0)
    N, H, E = 12, 32, 160          # nodes, hidden_dim, edges (small test shapes)

    k_x, k_e, k_src, k_dst, k_w1, k_w2 = jax.random.split(key, 6)
    x = jax.random.normal(k_x, (N, H), dtype=jnp.float32)
    edge_attr = jax.random.normal(k_e, (E, H), dtype=jnp.float32)
    edge_index = jnp.stack([
        jax.random.randint(k_src, (E,), 0, N, dtype=jnp.int32),
        jax.random.randint(k_dst, (E,), 0, N, dtype=jnp.int32),
    ])

    # Deterministic synthetic parameters (torch Linear weight is [out,in]; passed transposed).
    w1_t = jax.random.normal(k_w1, (H, 4 * H), dtype=jnp.float32) * 0.02   # GINE nn ffn-1
    w2_t = jax.random.normal(k_w2, (4 * H, H), dtype=jnp.float32) * 0.02   # GINE nn ffn-2
    gamma = jnp.ones((1, H), dtype=jnp.float32)                            # norm1.weight
    beta = jnp.zeros((1, H), dtype=jnp.float32)                            # norm1.bias

    ref = _reference(x, edge_index, edge_attr, w1_t, w2_t, gamma, beta)

    # Exact-parity path: f32 MXU operands, erf-GELU.
    out = conv_layer_gine(x, edge_index, edge_attr, w1_t, w2_t, gamma, beta)
    out = jax.block_until_ready(out)
    assert jnp.allclose(out, ref, atol=1e-4, rtol=1e-4), "mismatch vs JAX reference (f32)"

    # Fast path for v6e/v7x: bf16 MXU operands + tanh-GELU (training-grade numerics).
    out_fast = conv_layer_gine(x, edge_index, edge_attr, w1_t, w2_t, gamma, beta,
                               mxu_dtype=jnp.bfloat16, gelu_approx=True)
    out_fast = jax.block_until_ready(out_fast)
    max_err = float(jnp.max(jnp.abs(out_fast - ref)))
    assert max_err < 0.25, f"bf16 fast path diverged (max abs err {max_err})"

    print("KERNEL_OK")
</pallas_src>

<mosaic_0001>
module attributes {stable_mosaic.version = 11 : i64} {
  func.func @_gine_aggregate_kernel(%arg0: i32, %arg1: memref<16x128xf32, #tpu.memory_space<vmem>>, %arg2: memref<256x128xf32, #tpu.memory_space<vmem>>, %arg3: memref<256x1xi32, #tpu.memory_space<vmem>>, %arg4: memref<1x256xi32, #tpu.memory_space<vmem>>, %arg5: memref<16x128xf32, #tpu.memory_space<vmem>>) attributes {dimension_semantics = [#tpu.dimension_semantics<arbitrary>], iteration_bounds = array<i64: 1>, scalar_prefetch = 0 : i64, scratch_operands = 0 : i64, tpu.core_type = #tpu.core_type<tc>, window_params = [{pipeline_mode = #tpu.pipeline_mode<synchronous>, transform_indices = @transform_0, window_bounds = array<i64: 16, 128>}, {transform_indices = @transform_1, window_bounds = array<i64: 256, 128>}, {transform_indices = @transform_2, window_bounds = array<i64: 256, 1>}, {transform_indices = @transform_3, window_bounds = array<i64: 1, 256>}, {pipeline_mode = #tpu.pipeline_mode<synchronous>, transform_indices = @transform_4, window_bounds = array<i64: 16, 128>}]} {
    %c0_i32 = arith.constant 0 : i32
    %0 = arith.cmpi eq, %arg0, %c0_i32 : i32
    %1 = arith.extui %0 : i1 to i32
    %c0_i32_0 = arith.constant 0 : i32
    %2 = arith.cmpi ne, %1, %c0_i32_0 : i32
    scf.if %2 {
      %cst_14 = arith.constant 0.000000e+00 : f32
      %25 = vector.broadcast %cst_14 : f32 to vector<16x128xf32>
      %c0_15 = arith.constant 0 : index
      %c0_16 = arith.constant 0 : index
      %26 = vector.load %arg5[%c0_15, %c0_16] : memref<16x128xf32, #tpu.memory_space<vmem>>, vector<16x128xf32>
      tpu.vector_store %arg5[%c0_15, %c0_16], %25 {strides = array<i32>} : memref<16x128xf32, #tpu.memory_space<vmem>>, vector<16x128xf32>,
    } else {
    }
    %c0 = arith.constant 0 : index
    %c0_1 = arith.constant 0 : index
    %3 = vector.load %arg3[%c0, %c0_1] : memref<256x1xi32, #tpu.memory_space<vmem>>, vector<256x1xi32>
    %4 = tpu.iota {dimensions = array<i32: 1>} : vector<256x16xi32>
    %5 = vector.broadcast %3 : vector<256x1xi32> to vector<256x16xi32>
    %6 = arith.cmpi eq, %4, %5 : vector<256x16xi32>
    %7 = arith.extui %6 : vector<256x16xi1> to vector<256x16xi32>
    %8 = arith.sitofp %7 : vector<256x16xi32> to vector<256x16xf32>
    %c0_2 = arith.constant 0 : index
    %c0_3 = arith.constant 0 : index
    %9 = vector.load %arg1[%c0_2, %c0_3] : memref<16x128xf32, #tpu.memory_space<vmem>>, vector<16x128xf32>
    %cst = arith.constant dense<0.000000e+00> : vector<256x128xf32>
    %10 = tpu.matmul %8, %9, %cst {dimension_numbers = #tpu.dot_dimension_numbers<[1], [0], [0], [1], [0, 0, 1, 1], [], []>} : vector<256x16xf32>, vector<16x128xf32>, vector<256x128xf32> -> vector<256x128xf32>
    %c0_4 = arith.constant 0 : index
    %c0_5 = arith.constant 0 : index
    %11 = vector.load %arg2[%c0_4, %c0_5] : memref<256x128xf32, #tpu.memory_space<vmem>>, vector<256x128xf32>
    %12 = arith.addf %10, %11 : vector<256x128xf32>
    %cst_6 = arith.constant 0.000000e+00 : f32
    %13 = vector.broadcast %cst_6 : f32 to vector<256x128xf32>
    %14 = arith.maximumf %12, %13 : vector<256x128xf32>
    %c0_7 = arith.constant 0 : index
    %c0_8 = arith.constant 0 : index
    %15 = vector.load %arg4[%c0_7, %c0_8] : memref<1x256xi32, #tpu.memory_space<vmem>>, vector<1x256xi32>
    %16 = tpu.iota {dimensions = array<i32: 0>} : vector<16x256xi32>
    %17 = vector.broadcast %15 : vector<1x256xi32> to vector<16x256xi32>
    %18 = arith.cmpi eq, %16, %17 : vector<16x256xi32>
    %c0_9 = arith.constant 0 : index
    %c0_10 = arith.constant 0 : index
    %19 = vector.load %arg5[%c0_9, %c0_10] : memref<16x128xf32, #tpu.memory_space<vmem>>, vector<16x128xf32>
    %20 = arith.extui %18 : vector<16x256xi1> to vector<16x256xi32>
    %21 = arith.sitofp %20 : vector<16x256xi32> to vector<16x256xf32>
    %cst_11 = arith.constant dense<0.000000e+00> : vector<16x128xf32>
    %22 = tpu.matmul %21, %14, %cst_11 {dimension_numbers = #tpu.dot_dimension_numbers<[1], [0], [0], [1], [0, 0, 1, 1], [], []>} : vector<16x256xf32>, vector<256x128xf32>, vector<16x128xf32> -> vector<16x128xf32>
    %23 = arith.addf %19, %22 : vector<16x128xf32>
    %c0_12 = arith.constant 0 : index
    %c0_13 = arith.constant 0 : index
    %24 = vector.load %arg5[%c0_12, %c0_13] : memref<16x128xf32, #tpu.memory_space<vmem>>, vector<16x128xf32>
    tpu.vector_store %arg5[%c0_12, %c0_13], %23 {strides = array<i32>} : memref<16x128xf32, #tpu.memory_space<vmem>>, vector<16x128xf32>,
    return
  }
  func.func @transform_0(%arg0: i32) -> (i32, i32) {
    %c0_i32 = arith.constant 0 : i32
    %c0_i32_0 = arith.constant 0 : i32
    %c0_i32_1 = arith.constant 0 : i32
    return %c0_i32, %c0_i32_0 : i32, i32
  }
  func.func @transform_1(%arg0: i32) -> (i32, i32) {
    %c0_i32 = arith.constant 0 : i32
    %c0_i32_0 = arith.constant 0 : i32
    return %arg0, %c0_i32 : i32, i32
  }
  func.func @transform_2(%arg0: i32) -> (i32, i32) {
    %c0_i32 = arith.constant 0 : i32
    %c0_i32_0 = arith.constant 0 : i32
    return %arg0, %c0_i32 : i32, i32
  }
  func.func @transform_3(%arg0: i32) -> (i32, i32) {
    %c0_i32 = arith.constant 0 : i32
    %c0_i32_0 = arith.constant 0 : i32
    return %c0_i32, %arg0 : i32, i32
  }
  func.func @transform_4(%arg0: i32) -> (i32, i32) {
    %c0_i32 = arith.constant 0 : i32
    %c0_i32_0 = arith.constant 0 : i32
    %c0_i32_1 = arith.constant 0 : i32
    return %c0_i32, %c0_i32_0 : i32, i32
  }
}

</mosaic_0001>

<bundles_post_ra>
// kernel: tpu_custom_call.1
= control target key start
LH: loop header
LB: loop body
LE: loop exit
PB: predicated region body
PF: predicated region fallthrough
CT: control target
= control target key end

     0   :  { %9 = vsyncpa [#allocation3], 0  ;;  %s1158_s0 = inlined_call_operand.hbm [shape: f32[16,128], index: 0, kind: input, shape index: {}]   ;;  %s1159_s1 = inlined_call_operand.vmem [shape: f32[256,128], index: 1, kind: input, shape index: {}]   ;;  %s1160_s2 = inlined_call_operand.vmem [shape: s32[256,1], index: 2, kind: input, shape index: {}]   ;;  %s1161_s3 = inlined_call_operand.vmem [shape: s32[1,256], index: 3, kind: input, shape index: {}]   ;;  %s1162_s4 = inlined_call_operand.hbm [shape: f32[16,128], index: 4, kind: output, shape index: {}]  }
   0x1   :  { %10 = vsyncpa [#allocation4], 0  ;;  %s15_s17 = sshll.u32 %s1158_s0, 4  ;;  %s771_s18 = smov [#allocation2]   ;;  %s16_s17 = int_to_ptr.hbm [resolvable:$true] %s15_s17 }
   0x2   :  { %s17_s19 = sshll.u32 %s771_s18, 4  ;;  %s772_s20 = smov 128   ;;  %s18_s19 = int_to_ptr.vmem [resolvable:$true] %s17_s19 }
   0x3   :  { %s773_s21 = smov 8  }
   0x4   :  { %23 = dma.hbm_to_vmem [thread:$0]  %s16_s17, 256, %s18_s19, [#allocation3], %s772_s20, %s772_s20, %s773_s21  }
   0x5   :  { %767 = dma.done.wait [#allocation3], 256  }
   0x6   :  { %768 = vsyncadd [#allocation3], 4294967040  ;;  %v774_v0 = vmov 0   ;;  %v62_v1 = vld [vmem:[%s1160_s2 + $0xb0] sm:$0xff]  ;;  %v41_v2 = vld [vmem:[%s1160_s2 + $0x8] sm:$0xff]  ;;  %v72_v37 = vlaneseq  ;;  %vm300_vm0 = vcmask 130048  }
   0x7   :  { %718 = vset.pattern.permute.xlu2 %v774_v0  ;;  %717 = vset.pattern.permute.xlu1 %v774_v0  ;;  %v40_v3 = vld [vmem:[%s1160_s2] sm:$0xff]  ;;  %v63_v4 = vld [vmem:[%s1160_s2 + $0xb8] sm:$0xff]  ;;  %v65_v5 = vld [vmem:[%s1160_s2 + $0xc8] sm:$0xff]  ;;  %v775_v42 = vmov 0.0   ;;  %s618_s25 = sshll.u32 %s1162_s4, 4  ;;  %s619_s25 = int_to_ptr.hbm [resolvable:$true] %s618_s25 }
   0x8   :  { %716 = vset.pattern.permute.xlu0 %v774_v0  ;;  %78 = vperm.xlu2 %718, %v41_v2   ;;  %v64_v6 = vld [vmem:[%s1160_s2 + $0xc0] sm:$0xff]  ;;  %v42_v7 = vld [vmem:[%s1160_s2 + $0x10] sm:$0xff]  ;;  %v43_v8 = vld [vmem:[%s1160_s2 + $0x18] sm:$0xff]  ;;  %v906_v38 = vand.u32 127, %v72_v37 }
   0x9   :  { %141 = vperm.xlu0 %716, %v62_v1   ;;  %75 = vperm.xlu1 %717, %v40_v3   ;;  %v66_v9 = vld [vmem:[%s1160_s2 + $0xd0] sm:$0xff]  ;;  %v67_v10 = vld [vmem:[%s1160_s2 + $0xd8] sm:$0xff]  ;;  %v44_v11 = vld [vmem:[%s1160_s2 + $0x20] sm:$0xff] }
   0xa   :  { %v55_v12 = vld [vmem:[%s1160_s2 + $0x78] sm:$0xff]  ;;  %v68_v13 = vld [vmem:[%s1160_s2 + $0xe0] sm:$0xff]  ;;  %v45_v14 = vld [vmem:[%s1160_s2 + $0x28] sm:$0xff] }
   0xb   :  { %v56_v15 = vld [vmem:[%s1160_s2 + $0x80] sm:$0xff]  ;;  %v69_v16 = vld [vmem:[%s1160_s2 + $0xe8] sm:$0xff]  ;;  %v46_v17 = vld [vmem:[%s1160_s2 + $0x30] sm:$0xff] }
   0xc   :  { %v57_v18 = vld [vmem:[%s1160_s2 + $0x88] sm:$0xff]  ;;  %v51_v19 = vld [vmem:[%s1160_s2 + $0x58] sm:$0xff]  ;;  %v58_v20 = vld [vmem:[%s1160_s2 + $0x90] sm:$0xff] }
   0xd   :  { %v70_v21 = vld [vmem:[%s1160_s2 + $0xf0] sm:$0xff]  ;;  %v47_v22 = vld [vmem:[%s1160_s2 + $0x38] sm:$0xff]  ;;  %v52_v24 = vld [vmem:[%s1160_s2 + $0x60] sm:$0xff] }
   0xe   :  { %v71_v23 = vld [vmem:[%s1160_s2 + $0xf8] sm:$0xff]  ;;  %v53_v26 = vld [vmem:[%s1160_s2 + $0x68] sm:$0xff]  ;;  %v48_v27 = vld [vmem:[%s1160_s2 + $0x40] sm:$0xff] }
   0xf   :  { %v59_v25 = vld [vmem:[%s1160_s2 + $0x98] sm:$0xff]  ;;  %v60_v28 = vld [vmem:[%s1160_s2 + $0xa0] sm:$0xff]  ;;  %v54_v29 = vld [vmem:[%s1160_s2 + $0x70] sm:$0xff] }
  0x10   :  { %150 = vperm.xlu2 %718, %v65_v5   ;;  %v49_v30 = vld [vmem:[%s1160_s2 + $0x48] sm:$0xff]  ;;  %v50_v33 = vld [vmem:[%s1160_s2 + $0x50] sm:$0xff]  ;;  %v266_v34 = vld [vmem:[#allocation2] sm:$0xff] }
  0x11   :  { %144 = vperm.xlu0 %716, %v63_v4   ;;  %147 = vperm.xlu1 %717, %v64_v6   ;;  %v267_v31 = vld [vmem:[#allocation2 + $0x8] sm:$0xff] }
  0x12   :  { %v61_v32 = vld [vmem:[%s1160_s2 + $0xa8] sm:$0xff]  ;;  %411 = vmatpush.msra.mxu0 %v267_v31  ;;  %705 = vmatpush.msra.mxu3 %v267_v31 }
  0x13   :  { %704 = vmatpush.msra.mxu2 %v267_v31  ;;  %703 = vmatpush.msra.mxu1 %v267_v31 }
  0x14   :  { %412 = vmatpush.msra.mxu0 %v266_v34  ;;  %708 = vmatpush.msra.mxu3 %v266_v34 }
  0x15   :  { %707 = vmatpush.msra.mxu2 %v266_v34  ;;  %706 = vmatpush.msra.mxu1 %v266_v34 }
  0x18   :  { %84 = vperm.xlu2 %718, %v43_v8  }
  0x19   :  { %81 = vperm.xlu0 %716, %v42_v7   ;;  %153 = vperm.xlu1 %717, %v66_v9  }
  0x20   :  { %87 = vperm.xlu2 %718, %v44_v11  }
  0x21   :  { %156 = vperm.xlu0 %716, %v67_v10   ;;  %120 = vperm.xlu1 %717, %v55_v12  }
  0x28   :  { %90 = vperm.xlu2 %718, %v45_v14  }
  0x29   :  { %159 = vperm.xlu0 %716, %v68_v13   ;;  %123 = vperm.xlu1 %717, %v56_v15  }
  0x30   :  { %93 = vperm.xlu2 %718, %v46_v17  }
  0x31   :  { %162 = vperm.xlu0 %716, %v69_v16   ;;  %126 = vperm.xlu1 %717, %v57_v18  }
  0x38   :  { %129 = vperm.xlu2 %718, %v58_v20  }
  0x39   :  { %108 = vperm.xlu0 %716, %v51_v19   ;;  %165 = vperm.xlu1 %717, %v70_v21  }
  0x40   :  { %168 = vperm.xlu2 %718, %v71_v23  }
  0x41   :  { %96 = vperm.xlu0 %716, %v47_v22   ;;  %111 = vperm.xlu1 %717, %v52_v24  }
  0x48   :  { %114 = vperm.xlu2 %718, %v53_v26  }
  0x49   :  { %132 = vperm.xlu0 %716, %v59_v25   ;;  %99 = vperm.xlu1 %717, %v48_v27  }
  0x50   :  { %117 = vperm.xlu2 %718, %v54_v29  }
  0x51   :  { %135 = vperm.xlu0 %716, %v60_v28   ;;  %102 = vperm.xlu1 %717, %v49_v30  }
  0x59   :  { %138 = vperm.xlu0 %716, %v61_v32   ;;  %105 = vperm.xlu1 %717, %v50_v33  }
  0x62   :  { %v79_v35 = vpop.permute.xlu2 %78 }
  0x63   :  { %vm171_vm3 = vcmp.eq.s32.totalorder %v906_v38, %v79_v35 }
  0x64   :  { %v632_v46 = vsel %vm171_vm3, 1.0, %v775_v42 }
  0x6a   :  { %v151_v36 = vpop.permute.xlu2 %150 }
  0x6b   :  { %vm195_vm7 = vcmp.eq.s32.totalorder %v906_v38, %v151_v36 }
  0x6c   :  { %v656_v57 = vsel %vm195_vm7, 1.0, %v775_v42 }
  0x72   :  { %v85_v39 = vpop.permute.xlu2 %84 }
  0x73   :  { %vm173_vm8 = vcmp.eq.s32.totalorder %v906_v38, %v85_v39 }
  0x74   :  { %v634_v58 = vsel %vm173_vm8, 1.0, %v775_v42 }
  0x7a   :  { %v88_v47 = vpop.permute.xlu2 %87 }
  0x7b   :  { %v142_v40 = vpop.permute.xlu0 %141  ;;  %v76_v41 = vpop.permute.xlu1 %75  ;;  %vm174_vm11 = vcmp.eq.s32.totalorder %v906_v38, %v88_v47 }
  0x7c   :  { %vm192_vm1 = vcmp.eq.s32.totalorder %v906_v38, %v142_v40  ;;  %vm170_vm2 = vcmp.eq.s32.totalorder %v906_v38, %v76_v41  ;;  %v635_v0 = vsel %vm174_vm11, 1.0, %v775_v42 }
  0x7d   :  { %v653_v43 = vsel %vm192_vm1, 1.0, %v775_v42  ;;  %v631_v44 = vsel %vm170_vm2, 1.0, %v775_v42 }
  0x7e   :  { %685 = vmatmul.msk.f32.vlgmr.msra.gmra.mxu3 %vm300_vm0, %v653_v43  ;;  %663 = vmatmul.msk.f32.vlgmr.msra.gmra.mxu0 %vm300_vm0, %v631_v44 }
  0x82   :  { %v91_v54 = vpop.permute.xlu2 %90 }
  0x83   :  { %v145_v45 = vpop.permute.xlu0 %144  ;;  %v148_v48 = vpop.permute.xlu1 %147  ;;  %vm175_vm14 = vcmp.eq.s32.totalorder %v906_v38, %v91_v54 }
  0x84   :  { %vm193_vm4 = vcmp.eq.s32.totalorder %v906_v38, %v145_v45  ;;  %vm194_vm5 = vcmp.eq.s32.totalorder %v906_v38, %v148_v48  ;;  %v636_v6 = vsel %vm175_vm14, 1.0, %v775_v42 }
  0x85   :  { %v654_v49 = vsel %vm193_vm4, 1.0, %v775_v42  ;;  %v655_v52 = vsel %vm194_vm5, 1.0, %v775_v42 }
  0x86   :  { %686 = vmatmul.msk.f32.gmra.mxu3 %vm300_vm0, %v654_v49  ;;  %664 = vmatmul.msk.f32.gmra.mxu0 %vm300_vm0, %v632_v46 }
  0x8a   :  { %v94_v60 = vpop.permute.xlu2 %93 }
  0x8b   :  { %v82_v50 = vpop.permute.xlu0 %81  ;;  %v154_v51 = vpop.permute.xlu1 %153  ;;  %vm176_vm2 = vcmp.eq.s32.totalorder %v906_v38, %v94_v60 }
  0x8c   :  { %vm172_vm6 = vcmp.eq.s32.totalorder %v906_v38, %v82_v50  ;;  %vm196_vm10 = vcmp.eq.s32.totalorder %v906_v38, %v154_v51  ;;  %v637_v13 = vsel %vm176_vm2, 1.0, %v775_v42 }
  0x8d   :  { %v633_v53 = vsel %vm172_vm6, 1.0, %v775_v42  ;;  %v657_v63 = vsel %vm196_vm10, 1.0, %v775_v42 }
  0x8e   :  { %687 = vmatmul.msk.f32.gmra.mxu3 %vm300_vm0, %v655_v52  ;;  %665 = vmatmul.msk.f32.gmra.mxu0 %vm300_vm0, %v633_v53 }
  0x92   :  { %v130_v2 = vpop.permute.xlu2 %129 }
  0x93   :  { %v157_v55 = vpop.permute.xlu0 %156  ;;  %v121_v56 = vpop.permute.xlu1 %120  ;;  %vm188_vm3 = vcmp.eq.s32.totalorder %v906_v38, %v130_v2 }
  0x94   :  { %vm185_vm9 = vcmp.eq.s32.totalorder %v906_v38, %v121_v56  ;;  %vm197_vm13 = vcmp.eq.s32.totalorder %v906_v38, %v157_v55  ;;  %v649_v14 = vsel %vm188_vm3, 1.0, %v775_v42 }
  0x95   :  { %v646_v59 = vsel %vm185_vm9, 1.0, %v775_v42  ;;  %v658_v5 = vsel %vm197_vm13, 1.0, %v775_v42 }
  0x96   :  { %688 = vmatmul.msk.f32.gmra.mxu3 %vm300_vm0, %v656_v57  ;;  %666 = vmatmul.msk.f32.gmra.mxu0 %vm300_vm0, %v634_v58 }
  0x97   :  { %678 = vmatmul.msk.f32.vlgmr.msra.gmra.mxu2 %vm300_vm0, %v646_v59 }
  0x9a   :  { %v169_v9 = vpop.permute.xlu2 %168 }
  0x9b   :  { %v160_v61 = vpop.permute.xlu0 %159  ;;  %v124_v62 = vpop.permute.xlu1 %123 }
  0x9c   :  { %vm186_vm12 = vcmp.eq.s32.totalorder %v906_v38, %v124_v62  ;;  %vm198_vm1 = vcmp.eq.s32.totalorder %v906_v38, %v160_v61 }
  0x9d   :  { %v647_v1 = vsel %vm186_vm12, 1.0, %v775_v42  ;;  %v659_v11 = vsel %vm198_vm1, 1.0, %v775_v42  ;;  %vm201_vm12 = vcmp.eq.s32.totalorder %v906_v38, %v169_v9 }
  0x9e   :  { %689 = vmatmul.msk.f32.gmra.mxu3 %vm300_vm0, %v657_v63  ;;  %667 = vmatmul.msk.f32.gmra.mxu0 %vm300_vm0, %v635_v0  ;;  %v662_v30 = vsel %vm201_vm12, 1.0, %v775_v42 }
  0x9f   :  { %679 = vmatmul.msk.f32.gmra.mxu2 %vm300_vm0, %v647_v1 }
  0xa2   :  { %v115_v19 = vpop.permute.xlu2 %114 }
  0xa3   :  { %v163_v3 = vpop.permute.xlu0 %162  ;;  %v127_v4 = vpop.permute.xlu1 %126  ;;  %vm183_vm9 = vcmp.eq.s32.totalorder %v906_v38, %v115_v19 }
  0xa4   :  { %vm187_vm15 = vcmp.eq.s32.totalorder %v906_v38, %v127_v4  ;;  %vm199_vm5 = vcmp.eq.s32.totalorder %v906_v38, %v163_v3  ;;  %v644_v25 = vsel %vm183_vm9, 1.0, %v775_v42  ;;  %v281_v3 = vld [vmem:[%s1159_s1 + $0x68] sm:$0xff]  ;;  %v282_v4 = vld [vmem:[%s1159_s1 + $0x70] sm:$0xff] }
  0xa5   :  { %v648_v7 = vsel %vm187_vm15, 1.0, %v775_v42  ;;  %v660_v17 = vsel %vm199_vm5, 1.0, %v775_v42 }
  0xa6   :  { %690 = vmatmul.msk.f32.gmra.mxu3 %vm300_vm0, %v658_v5  ;;  %668 = vmatmul.msk.f32.gmra.mxu0 %vm300_vm0, %v636_v6  ;;  %v280_v5 = vld [vmem:[%s1159_s1 + $0x60] sm:$0xff] }
  0xa7   :  { %680 = vmatmul.msk.f32.gmra.mxu2 %vm300_vm0, %v648_v7 }
  0xaa   :  { %v118_v27 = vpop.permute.xlu2 %117 }
  0xab   :  { %v109_v8 = vpop.permute.xlu0 %108  ;;  %v166_v10 = vpop.permute.xlu1 %165  ;;  %vm184_vm13 = vcmp.eq.s32.totalorder %v906_v38, %v118_v27  ;;  %v276_v27 = vld [vmem:[%s1159_s1 + $0x40] sm:$0xff] }
  0xac   :  { %vm181_vm4 = vcmp.eq.s32.totalorder %v906_v38, %v109_v8  ;;  %vm200_vm8 = vcmp.eq.s32.totalorder %v906_v38, %v166_v10  ;;  %v645_v32 = vsel %vm184_vm13, 1.0, %v775_v42 }
  0xad   :  { %v642_v12 = vsel %vm181_vm4, 1.0, %v775_v42  ;;  %v661_v23 = vsel %vm200_vm8, 1.0, %v775_v42 }
  0xae   :  { %674 = vmatmul.msk.f32.vlgmr.msra.gmra.mxu1 %vm300_vm0, %v642_v12  ;;  %691 = vmatmul.msk.f32.gmra.mxu3 %vm300_vm0, %v659_v11  ;;  %v279_v11 = vld [vmem:[%s1159_s1 + $0x58] sm:$0xff] }
  0xaf   :  { %669 = vmatmul.msk.f32.gmra.mxu0 %vm300_vm0, %v637_v13  ;;  %681 = vmatmul.msk.f32.gmra.mxu2 %vm300_vm0, %v649_v14  ;;  %v298_v13 = vld [vmem:[%s1159_s1 + $0xf0] sm:$0xff] }
  0xb3   :  { %v97_v15 = vpop.permute.xlu0 %96  ;;  %v112_v16 = vpop.permute.xlu1 %111 }
  0xb4   :  { %vm177_vm6 = vcmp.eq.s32.totalorder %v906_v38, %v97_v15  ;;  %vm182_vm7 = vcmp.eq.s32.totalorder %v906_v38, %v112_v16  ;;  %v299_v15 = vld [vmem:[%s1159_s1 + $0xf8] sm:$0xff] }
  0xb5   :  { %v638_v18 = vsel %vm177_vm6, 1.0, %v775_v42  ;;  %v643_v20 = vsel %vm182_vm7, 1.0, %v775_v42 }
  0xb6   :  { %692 = vmatmul.msk.f32.gmra.mxu3 %vm300_vm0, %v660_v17  ;;  %675 = vmatmul.msk.f32.gmra.mxu1 %vm300_vm0, %v643_v20  ;;  %v297_v17 = vld [vmem:[%s1159_s1 + $0xe8] sm:$0xff] }
  0xb7   :  { %670 = vmatmul.msk.f32.gmra.mxu0 %vm300_vm0, %v638_v18 }
  0xbb   :  { %v133_v21 = vpop.permute.xlu0 %132  ;;  %v100_v22 = vpop.permute.xlu1 %99 }
  0xbc   :  { %vm189_vm10 = vcmp.eq.s32.totalorder %v906_v38, %v133_v21  ;;  %vm178_vm11 = vcmp.eq.s32.totalorder %v906_v38, %v100_v22  ;;  %v277_v21 = vld [vmem:[%s1159_s1 + $0x48] sm:$0xff] }
  0xbd   :  { %v650_v24 = vsel %vm189_vm10, 1.0, %v775_v42  ;;  %v639_v26 = vsel %vm178_vm11, 1.0, %v775_v42 }
  0xbe   :  { %682 = vmatmul.msk.f32.gmra.mxu2 %vm300_vm0, %v650_v24  ;;  %693 = vmatmul.msk.f32.gmra.mxu3 %vm300_vm0, %v661_v23  ;;  %v278_v23 = vld [vmem:[%s1159_s1 + $0x50] sm:$0xff]  ;;  %v296_v24 = vld [vmem:[%s1159_s1 + $0xe0] sm:$0xff] }
  0xbf   :  { %671 = vmatmul.msk.f32.gmra.mxu0 %vm300_vm0, %v639_v26  ;;  %676 = vmatmul.msk.f32.gmra.mxu1 %vm300_vm0, %v644_v25 }
  0xc3   :  { %v136_v28 = vpop.permute.xlu0 %135  ;;  %v103_v29 = vpop.permute.xlu1 %102 }
  0xc4   :  { %vm190_vm14 = vcmp.eq.s32.totalorder %v906_v38, %v136_v28  ;;  %vm179_vm15 = vcmp.eq.s32.totalorder %v906_v38, %v103_v29 }
  0xc5   :  { %v651_v31 = vsel %vm190_vm14, 1.0, %v775_v42  ;;  %v640_v33 = vsel %vm179_vm15, 1.0, %v775_v42 }
  0xc6   :  { %683 = vmatmul.msk.f32.gmra.mxu2 %vm300_vm0, %v651_v31  ;;  %694 = vmatmul.msk.f32.gmra.mxu3 %vm300_vm0, %v662_v30  ;;  %v295_v30 = vld [vmem:[%s1159_s1 + $0xd8] sm:$0xff] }
  0xc7   :  { %672 = vmatmul.msk.f32.gmra.mxu0 %vm300_vm0, %v640_v33  ;;  %677 = vmatmul.msk.f32.gmra.mxu1 %vm300_vm0, %v645_v32 }
  0xcb   :  { %v139_v34 = vpop.permute.xlu0 %138  ;;  %v106_v35 = vpop.permute.xlu1 %105 }
  0xcc   :  { %vm191_vm1 = vcmp.eq.s32.totalorder %v906_v38, %v139_v34  ;;  %vm180_vm2 = vcmp.eq.s32.totalorder %v906_v38, %v106_v35  ;;  %v283_v38 = vld [vmem:[%s1159_s1 + $0x78] sm:$0xff] }
  0xcd   :  { %v652_v36 = vsel %vm191_vm1, 1.0, %v775_v42  ;;  %v641_v39 = vsel %vm180_vm2, 1.0, %v775_v42  ;;  %v275_v35 = vld [vmem:[%s1159_s1 + $0x38] sm:$0xff] }
  0xce   :  { %684 = vmatmul.msk.f32.gmra.mxu2 %vm300_vm0, %v652_v36 }
  0xcf   :  { %673 = vmatmul.msk.f32.gmra.mxu0 %vm300_vm0, %v641_v39  ;;  %v294_v39 = vld [vmem:[%s1159_s1 + $0xd0] sm:$0xff] }
  0xfb   :  { %v1004_v40 = vpop.f32.mrf.mxu0 }
 0x101   :  { %v1006_v41 = vpop.f32.mrf.mxu3 }
 0x103   :  { %v1008_v43 = vpop.f32.mrf.mxu0 }
 0x109   :  { %v1010_v44 = vpop.f32.mrf.mxu3 }
 0x10b   :  { %v1012_v45 = vpop.f32.mrf.mxu0 }
 0x111   :  { %v1014_v46 = vpop.f32.mrf.mxu3 }
 0x113   :  { %v1016_v47 = vpop.f32.mrf.mxu0 }
 0x119   :  { %v1021_v42 = vpop.f32.mrf.mxu3 }
 0x11a   :  { %v459_v48 = vpop.f32.mrf.mxu2 }
 0x11b   :  { %v460_v49 = vadd.f32 %v459_v48, %v283_v38  ;;  %v1023_v50 = vpop.f32.mrf.mxu0 }
 0x11d   :  { %v525_v51 = vmax.f32 %v460_v49, 0.0 }
 0x11f   :  { %562 = vmatpush.msrb.mxu1 %v525_v51 }
 0x121   :  { %v1025_v52 = vpop.f32.mrf.mxu3 }
 0x122   :  { %v1029_v54 = vpop.f32.mrf.mxu2 }
 0x123   :  { %v1027_v53 = vpop.f32.mrf.mxu0 }
 0x129   :  { %v495_v55 = vpop.f32.mrf.mxu3 }
 0x12a   :  { %v1033_v59 = vpop.f32.mrf.mxu2  ;;  %v496_v51 = vadd.f32 %v495_v55, %v295_v30 }
 0x12b   :  { %v447_v56 = vpop.f32.mrf.mxu1 }
 0x12c   :  { %v1031_v57 = vpop.f32.mrf.mxu0  ;;  %v448_v16 = vadd.f32 %v447_v56, %v279_v11  ;;  %v274_v56 = vld [vmem:[%s1159_s1 + $0x30] sm:$0xff] }
 0x12e   :  { %v521_v31 = vmax.f32 %v448_v16, 0.0 }
 0x131   :  { %v498_v58 = vpop.f32.mrf.mxu3 }
 0x132   :  { %v1035_v1 = vpop.f32.mrf.mxu2  ;;  %v499_v34 = vadd.f32 %v498_v58, %v296_v24 }
 0x133   :  { %v450_v61 = vpop.f32.mrf.mxu1 }
 0x134   :  { %v435_v60 = vpop.f32.mrf.mxu0  ;;  %v451_v12 = vadd.f32 %v450_v61, %v280_v5  ;;  %v293_v61 = vld [vmem:[%s1159_s1 + $0xc8] sm:$0xff]  ;;  %v538_v55 = vmax.f32 %v499_v34, 0.0 }
 0x136   :  { %v522_v25 = vmax.f32 %v451_v12, 0.0  ;;  %v290_v12 = vld [vmem:[%s1159_s1 + $0xb0] sm:$0xff] }
 0x139   :  { %v501_v62 = vpop.f32.mrf.mxu3 }
 0x13a   :  { %v502_v26 = vadd.f32 %v501_v62, %v297_v17  ;;  %v436_v62 = vadd.f32 %v435_v60, %v275_v35  ;;  %v490_v60 = vadd.f32 %v1021_v42, %v293_v61  ;;  %v271_v42 = vld [vmem:[%s1159_s1 + $0x18] sm:$0xff] }
 0x13b   :  { %v424_v16 = vadd.f32 %v1016_v47, %v271_v42  ;;  %v288_v47 = vld [vmem:[%s1159_s1 + $0xa0] sm:$0xff] }
 0x13c   :  { %v438_v63 = vpop.f32.mrf.mxu0  ;;  %v453_v0 = vpop.f32.mrf.mxu1  ;;  %v539_v58 = vmax.f32 %v502_v26, 0.0 }
 0x13d   :  { %v454_v8 = vadd.f32 %v453_v0, %v281_v3  ;;  %v439_v38 = vadd.f32 %v438_v63, %v276_v27  ;;  %v273_v63 = vld [vmem:[%s1159_s1 + $0x28] sm:$0xff]  ;;  %v292_v3 = vld [vmem:[%s1159_s1 + $0xc0] sm:$0xff]  ;;  %v513_v26 = vmax.f32 %v424_v16, 0.0 }
 0x13f   :  { %v523_v18 = vmax.f32 %v454_v8, 0.0  ;;  %v518_v5 = vmax.f32 %v439_v38, 0.0  ;;  %v430_v8 = vadd.f32 %v1027_v53, %v273_v63 }
 0x141   :  { %v504_v2 = vpop.f32.mrf.mxu3  ;;  %v1046_v9 = vpop.f32.mrf.mxu2  ;;  %v515_v17 = vmax.f32 %v430_v8, 0.0 }
 0x142   :  { %v505_v20 = vadd.f32 %v504_v2, %v298_v13  ;;  %v493_v2 = vadd.f32 %v1025_v52, %v294_v39  ;;  %v272_v52 = vld [vmem:[%s1159_s1 + $0x20] sm:$0xff]  ;;  %v544_v39 = vshrl.u32 %v72_v37, 7 }
 0x143   :  { %v427_v13 = vadd.f32 %v1023_v50, %v272_v52  ;;  %v481_v50 = vadd.f32 %v1006_v41, %v290_v12 }
 0x144   :  { %v441_v6 = vpop.f32.mrf.mxu0  ;;  %v456_v7 = vpop.f32.mrf.mxu1  ;;  %v540_v36 = vmax.f32 %v505_v20, 0.0  ;;  %v536_v11 = vmax.f32 %v493_v2, 0.0 }
 0x145   :  { %v457_v10 = vadd.f32 %v456_v7, %v282_v4  ;;  %v442_v32 = vadd.f32 %v441_v6, %v277_v21  ;;  %v433_v4 = vadd.f32 %v1031_v57, %v274_v56  ;;  %v537_v6 = vmax.f32 %v496_v51, 0.0  ;;  %v291_v7 = vld [vmem:[%s1159_s1 + $0xb8] sm:$0xff] }
 0x146   :  { %v487_v57 = vadd.f32 %v1014_v46, %v292_v3  ;;  %v484_v53 = vadd.f32 %v1010_v44, %v291_v7  ;;  %v270_v46 = vld [vmem:[%s1159_s1 + $0x10] sm:$0xff]  ;;  %v269_v44 = vld [vmem:[%s1159_s1 + $0x8] sm:$0xff]  ;;  %v532_v27 = vmax.f32 %v481_v50, 0.0 }
 0x147   :  { %v524_v14 = vmax.f32 %v457_v10, 0.0  ;;  %v519_v0 = vmax.f32 %v442_v32, 0.0  ;;  %v517_v10 = vmax.f32 %v436_v62, 0.0  ;;  %v421_v21 = vadd.f32 %v1012_v45, %v270_v46  ;;  %v287_v45 = vld [vmem:[%s1159_s1 + $0x98] sm:$0xff] }
 0x148   :  { %v534_v20 = vmax.f32 %v487_v57, 0.0  ;;  %v533_v24 = vmax.f32 %v484_v53, 0.0  ;;  %v545_v62 = vadd.s32 8, %v544_v39 }
 0x149   :  { %563 = vmatpush.msrb.mxu1 %v524_v14  ;;  %v507_v19 = vpop.f32.mrf.mxu3  ;;  %v474_v48 = vpop.f32.mrf.mxu2  ;;  %v516_v14 = vmax.f32 %v433_v4, 0.0 }
 0x14a   :  { %v508_v22 = vadd.f32 %v507_v19, %v299_v15  ;;  %v535_v15 = vmax.f32 %v490_v60, 0.0 }
 0x14b   :  { %564 = vmatpush.msrb.mxu1 %v523_v18  ;;  %v289_v18 = vld [vmem:[%s1159_s1 + $0xa8] sm:$0xff] }
 0x14c   :  { %v541_v28 = vmax.f32 %v508_v22, 0.0  ;;  %v444_v29 = vpop.f32.mrf.mxu0  ;;  %v514_v22 = vmax.f32 %v427_v13, 0.0 }
 0x14d   :  { %v445_v33 = vadd.f32 %v444_v29, %v278_v23  ;;  %565 = vmatpush.msrb.mxu1 %v522_v25  ;;  %v268_v23 = vld [vmem:[%s1159_s1] sm:$0xff]  ;;  %v418_v25 = vadd.f32 %v1008_v43, %v269_v44  ;;  %v286_v43 = vld [vmem:[%s1159_s1 + $0x90] sm:$0xff] }
 0x14e   :  { %585 = vmatpush.msrb.mxu2 %v541_v28  ;;  %v475_v28 = vadd.f32 %v474_v48, %v288_v47  ;;  %v542_v29 = vld [vmem:[%s1161_s3] sm:$0x3]  ;;  %v415_v30 = vadd.f32 %v1004_v40, %v268_v23  ;;  %v469_v40 = vadd.f32 %v1035_v1, %v286_v43  ;;  %v776_v1 = vmov 1.0  }
 0x14f   :  { %v520_v49 = vmax.f32 %v445_v33, 0.0  ;;  %566 = vmatpush.msrb.mxu1 %v521_v31  ;;  %v512_v31 = vmax.f32 %v421_v21, 0.0  ;;  %v546_v32 = vperm.slane %v542_v29, 0  ;;  %v472_v33 = vadd.f32 %v1046_v9, %v287_v45 }
 0x150   :  { %586 = vmatpush.msrb.mxu2 %v540_v36  ;;  %v511_v35 = vmax.f32 %v418_v25, 0.0  ;;  %v285_v36 = vld [vmem:[%s1159_s1 + $0x88] sm:$0xff]  ;;  %v530_v38 = vmax.f32 %v475_v28, 0.0  ;;  %v510_v48 = vmax.f32 %v415_v30, 0.0  ;;  %v547_v37 = vperm.slane %v542_v29, 1 }
 0x151   :  { %567 = vmatpush.msrb.mxu1 %v520_v49  ;;  %v477_v19 = vpop.f32.mrf.mxu2  ;;  %v284_v49 = vld [vmem:[%s1159_s1 + $0x80] sm:$0xff]  ;;  %vm548_vm0 = vcmp.eq.s32.totalorder %v544_v39, %v546_v32  ;;  %v466_v9 = vadd.f32 %v1033_v59, %v285_v36  ;;  %v529_v51 = vmax.f32 %v472_v33, 0.0  ;;  %vm550_vm4 = vcmp.eq.s32.totalorder %v545_v62, %v546_v32  ;;  %s777_s1 = smov [#allocation5]  }
 0x152   :  { %587 = vmatpush.msrb.mxu2 %v539_v58  ;;  %v478_v41 = vadd.f32 %v477_v19, %v289_v18  ;;  %v463_v56 = vadd.f32 %v1029_v54, %v284_v49  ;;  %v528_v58 = vmax.f32 %v469_v40, 0.0  ;;  %vm549_vm3 = vcmp.eq.s32.totalorder %v544_v39, %v547_v37  ;;  %s616_s23 = sshll.u32 %s777_s1, 4  ;;  %s617_s23 = int_to_ptr.vmem [resolvable:$true] %s616_s23 }
 0x153   :  { %568 = vmatpush.msrb.mxu1 %v519_v0  ;;  %v527_v61 = vmax.f32 %v466_v9, 0.0  ;;  %vm551_vm5 = vcmp.eq.s32.totalorder %v545_v62, %v547_v37 }
 0x154   :  { %588 = vmatpush.msrb.mxu2 %v538_v55  ;;  %v531_v34 = vmax.f32 %v478_v41, 0.0  ;;  %v526_v0 = vmax.f32 %v463_v56, 0.0 }
 0x155   :  { %569 = vmatpush.msrb.mxu1 %v518_v5 }
 0x156   :  { %589 = vmatpush.msrb.mxu2 %v537_v6 }
 0x157   :  { %570 = vmatpush.msrb.mxu1 %v517_v10 }
 0x158   :  { %590 = vmatpush.msrb.mxu2 %v536_v11 }
 0x159   :  { %571 = vmatpush.msrb.mxu1 %v516_v14 }
 0x15a   :  { %591 = vmatpush.msrb.mxu2 %v535_v15 }
 0x15b   :  { %572 = vmatpush.msrb.mxu1 %v515_v17 }
 0x15c   :  { %592 = vmatpush.msrb.mxu2 %v534_v20 }
 0x15d   :  { %573 = vmatpush.msrb.mxu1 %v514_v22 }
 0x15e   :  { %593 = vmatpush.msrb.mxu2 %v533_v24 }
 0x15f   :  { %574 = vmatpush.msrb.mxu1 %v513_v26 }
 0x160   :  { %594 = vmatpush.msrb.mxu2 %v532_v27 }
 0x161   :  { %575 = vmatpush.msrb.mxu1 %v512_v31 }
 0x162   :  { %595 = vmatpush.msrb.mxu2 %v531_v34 }
 0x163   :  { %576 = vmatpush.msrb.mxu1 %v511_v35 }
 0x164   :  { %596 = vmatpush.msrb.mxu2 %v530_v38 }
 0x165   :  { %577 = vmatpush.msrb.mxu1 %v510_v48 }
 0x166   :  { %597 = vmatpush.msrb.mxu2 %v529_v51  ;;  %699 = vmatmul.msk.f32.vlgmr.msrb.gmra.mxu1 %vm548_vm0, %v776_v1 }
 0x168   :  { %598 = vmatpush.msrb.mxu2 %v528_v58 }
 0x16a   :  { %599 = vmatpush.msrb.mxu2 %v527_v61 }
 0x16c   :  { %600 = vmatpush.msrb.mxu2 %v526_v0 }
 0x16d   :  { %701 = vmatmul.msk.f32.vlgmr.msrb.gmra.mxu2 %vm549_vm3, %v776_v1 }
 0x16e   :  { %700 = vmatmul.msk.f32.gmra.mxu1 %vm550_vm4, %v776_v1 }
 0x175   :  { %702 = vmatmul.msk.f32.gmra.mxu2 %vm551_vm5, %v776_v1 }
 0x1e3   :  { %v579_v59 = vpop.f32.mrf.mxu1 }
 0x1eb   :  { %v582_v63 = vpop.f32.mrf.mxu1 }
 0x1f0   :  { %v602_v2 = vpop.f32.mrf.mxu2 }
 0x1f1   :  { %v603_v54 = vadd.f32 %v602_v2, %v579_v59 }
 0x1f3   :  { %610 = vst [vmem:[#allocation5] sm:$0xff] %v603_v54 }
 0x1f8   :  { %v605_v55 = vpop.f32.mrf.mxu2 }
 0x1f9   :  { %v606_v3 = vadd.f32 %v605_v55, %v582_v63 }
 0x1fb   :  { %611 = vst [vmem:[#allocation5 + $0x8] sm:$0xff] %v606_v3 }
 0x1fc   :  { %624 = dma.vmem_to_hbm [thread:$0]  %s617_s23, 256, %s619_s25, [#allocation4], %s772_s20, %s772_s20, %s773_s21  }
 0x1fd   :  { %769 = dma.done.wait [#allocation4], 256  }
 0x1fe   :  { %770 = vsyncadd [#allocation4], 4294967040 }
 0x1ff   :  { %629 = vsyncpa [#allocation3], 1 }
 0x200   :  { %630 = vsyncpa [#allocation4], 1 }

</bundles_post_ra>
